<compile_context>
chip_gen: v5e
topology: v5e:2x2
jax: 0.10.0
libtpu: 0.0.40
codegen_flags: <defaults>
</compile_context>

<pallas_src>
import functools
import numpy as np
import jax
import jax.numpy as jnp
from jax.experimental import pallas as pl
from jax.experimental.pallas import tpu as pltpu


# ----------------------------------------------------------------------------
# sf_modulation : faithful JAX translation of the PyTorch helper.
# NOTE: in the original forward() its results are immediately overwritten with
# torch.ones(...) before use; the wrapper reproduces that (use_modulation=False
# by default), so this is effectively dead code kept for fidelity.
# ----------------------------------------------------------------------------
def sf_modulation(xyz, mod, roipos):
    k = mod[:, :, :3]           # [B, F, 3]
    phase = mod[:, :, 4]        # [B, F]
    depth = mod[:, :, 3]        # [B, F]
    relint = mod[:, :, 5]       # [B, F]
    xyz_mod = xyz.at[:, :2].set(roipos + xyz[:, 0:2])
    em_phase = jnp.sum(xyz_mod[:, None] * k, -1) % (2 * np.pi) - phase
    deriv = depth[:, :, None] * k * jnp.cos(em_phase)[:, :, None] * relint[:, :, None]
    intensity = (1 + depth * jnp.sin(em_phase)) * relint
    return intensity, deriv


# ----------------------------------------------------------------------------
# Pallas kernel: one grid step per tile of B_TILE ROIs.
#
#   mu[f]        = bg + modI[:,f] * I * psf
#   dv[c,f] c<3  = modD[c,:,f] * (I*psf) + modI[:,f] * (I*psf_deriv[c]*scale_c)
#   dv[3,f]      = modI[:,f] * psf
#   (dbg == 1 channel is appended in the wrapper, NOT written by the kernel)
#
# Shapes inside the kernel (Bt = B_TILE, P = My*Mx, F = frame window):
#   scal_ref : [Bt, 2+4F]   packed as [I, bg, modI(F), modD_x(F), modD_y(F), modD_z(F)]
#   psf_ref  : [Bt, P]
#   psfd_ref : [3, Bt, P]   channel order (x, y, z)
#   mu_ref   : [F, Bt, P]
#   dv_ref   : [4, F, Bt, P]
# ----------------------------------------------------------------------------
def _simflux_kernel(scal_ref, psf_ref, psfd_ref, mu_ref, dv_ref,
                    *, num_frames, pixelsize):
    F = num_frames

    psf = psf_ref[...]                          # [Bt, P]
    I = scal_ref[:, 0:1]                        # [Bt, 1]
    bg = scal_ref[:, 1:2]                       # [Bt, 1]

    # Hoisted per-tile products (feedback: keep VALU / vreg pressure low once
    # B_TILE is large).  psf_deriv channel order is (x, y, z).
    I_psf = I * psf                             # [Bt, P]
    scales = (1.0 / pixelsize, 1.0 / pixelsize, 1.0 / 1000.0)
    I_psfd = [I * (psfd_ref[c] * scales[c]) for c in range(3)]   # each [Bt, P]

    for f in range(F):
        modI_f = scal_ref[:, 2 + f:3 + f]                        # [Bt, 1]
        mu_ref[f] = bg + modI_f * I_psf
        dv_ref[3, f] = modI_f * psf                              # dI channel
        for c in range(3):
            off = 2 + F + c * F + f
            modD_cf = scal_ref[:, off:off + 1]                   # [Bt, 1]
            dv_ref[c, f] = modD_cf * I_psf + modI_f * I_psfd[c]


def _pad_axis(x, axis, target):
    pad = target - x.shape[axis]
    if pad == 0:
        return x
    widths = [(0, 0)] * x.ndim
    widths[axis] = (0, pad)
    return jnp.pad(x, widths)


def _choose_b_tile(B, b_tile):
    """Pick a batch tile: big enough to amortize per-step overhead, but keep
    >=2 grid steps when possible (v7x megacore), and a multiple of 8 unless it
    covers the whole (tiny) batch."""
    if B >= 2 * b_tile:
        return int(b_tile)
    if B >= 16:
        half = (B + 1) // 2
        return ((half + 7) // 8) * 8
    return int(B)


# ----------------------------------------------------------------------------
# Wrapper (glue) — mirrors SIMFLUXModel_vector.forward
# ----------------------------------------------------------------------------
def simflux_forward(params, good_array, mod, roi_pos, psf_ev, psf_deriv,
                    divide_bg=False, roisize=16, pixelsize=65.0, b_tile=256,
                    use_modulation=False):
    params = params.astype(jnp.float32)
    B = params.shape[0]
    F = mod.shape[1]
    My, Mx = psf_ev.shape[1], psf_ev.shape[2]
    P = My * Mx

    xyz = params[:, :3]
    roipos = roi_pos[good_array, :]

    mod_intensity, mod_deriv = sf_modulation(xyz, mod, roipos)
    if not use_modulation:
        # The original PyTorch forward overwrites the modulation terms with
        # ones (making sf_modulation dead code); reproduce that by default.
        mod_intensity = jnp.ones(mod_intensity.shape, jnp.float32)   # [B, F]
        mod_deriv = jnp.ones(mod_deriv.shape, jnp.float32)           # [B, F, 3]

    # TODO(synk): the vectorial PSF model (Model_vectorial_psf / get_pupil_matrix
    # / thetalimits + the sim_params config from the external /vectorpsf package)
    # has no in-tree equivalent; psf_ev [B,My,Mx] and psf_deriv [B,My,Mx,>=3]
    # (channel order x,y,z first) are supplied as inputs instead.  If the PSF
    # producer can emit channel-leading derivatives, the moveaxis below goes away.

    bg_div = float(F) if divide_bg else 1.0

    # Pack all small per-ROI scalars into one [B, 2+4F] array (single DMA).
    scal = jnp.concatenate([
        params[:, 3:4],                     # I
        params[:, 4:5] / bg_div,            # bg
        mod_intensity.astype(jnp.float32),  # modI  [B, F]
        mod_deriv[:, :, 0].astype(jnp.float32),
        mod_deriv[:, :, 1].astype(jnp.float32),
        mod_deriv[:, :, 2].astype(jnp.float32),
    ], axis=-1)                                                      # [B, 2+4F]

    psf_flat = psf_ev.astype(jnp.float32).reshape(B, P)              # [B, P]
    psfd_cf = jnp.moveaxis(psf_deriv[..., :3].astype(jnp.float32),
                           -1, 0).reshape(3, B, P)                   # [3, B, P]

    B_TILE = _choose_b_tile(B, b_tile)
    Bp = ((B + B_TILE - 1) // B_TILE) * B_TILE
    if Bp != B:
        scal = _pad_axis(scal, 0, Bp)
        psf_flat = _pad_axis(psf_flat, 0, Bp)
        psfd_cf = _pad_axis(psfd_cf, 1, Bp)

    SW = 2 + 4 * F
    kernel = functools.partial(_simflux_kernel, num_frames=F,
                               pixelsize=float(pixelsize))

    mu_cf, dv_cf = pl.pallas_call(
        kernel,
        out_shape=(jax.ShapeDtypeStruct((F, Bp, P), jnp.float32),
                   jax.ShapeDtypeStruct((4, F, Bp, P), jnp.float32)),
        grid=(Bp // B_TILE,),
        in_specs=[
            pl.BlockSpec((B_TILE, SW), lambda b: (b, 0)),          # packed scalars
            pl.BlockSpec((B_TILE, P), lambda b: (b, 0)),           # psf_ev  [B,P]
            pl.BlockSpec((3, B_TILE, P), lambda b: (0, b, 0)),     # psf_drv [3,B,P]
        ],
        out_specs=(
            pl.BlockSpec((F, B_TILE, P), lambda b: (0, b, 0)),
            pl.BlockSpec((4, F, B_TILE, P), lambda b: (0, 0, b, 0)),
        ),
        compiler_params=pltpu.CompilerParams(
            dimension_semantics=("parallel",),
            vmem_limit_bytes=40 * 1024 * 1024),
    )(scal, psf_flat, psfd_cf)

    # Restore the PyTorch layouts.  Only the 4 computed channels are
    # transposed; the constant dbg channel is concatenated directly in the
    # final layout (the [..., 5]-last layout is mandated by the module).
    mu = jnp.transpose(mu_cf[:, :B], (1, 0, 2)).reshape(B, F, My, Mx)
    dxyzI = jnp.transpose(dv_cf[:, :, :B], (2, 1, 3, 0)).reshape(B, F, My, Mx, 4)
    dbg = jnp.ones((B, F, My, Mx, 1), jnp.float32)
    deriv = jnp.concatenate([dxyzI, dbg], axis=-1)
    return mu, deriv


if __name__ == "__main__":
    key = jax.random.PRNGKey(0)
    B, F, roisize = 2, 4, 16
    My = Mx = roisize
    pixelsize = 65.0

    k1, k2, k3, k4, k5, k6 = jax.random.split(key, 6)
    xy = jax.random.uniform(k1, (B, 2), minval=5.0, maxval=11.0)
    z = jax.random.uniform(k2, (B, 1), minval=-0.2, maxval=0.2)
    I = jnp.full((B, 1), 1000.0)
    bg = jnp.full((B, 1), 5.0)
    params = jnp.concatenate([xy, z, I, bg], -1).astype(jnp.float32)     # [B,5]

    mod = jax.random.uniform(k3, (B, F, 6), minval=0.0, maxval=1.0).astype(jnp.float32)
    roi_pos = jax.random.randint(k4, (8, 2), 0, 32).astype(jnp.float32)
    good_array = jnp.array([1, 5], dtype=jnp.int32)

    # Synthetic stand-ins for the vectorial PSF model output.
    psf_ev = jax.random.uniform(k5, (B, My, Mx), dtype=jnp.float32)
    psf_deriv = jax.random.normal(k6, (B, My, Mx, 5), dtype=jnp.float32)

    mu, deriv = simflux_forward(params, good_array, mod, roi_pos,
                                psf_ev, psf_deriv, divide_bg=False,
                                roisize=roisize, pixelsize=pixelsize)
    jax.block_until_ready(mu)
    jax.block_until_ready(deriv)

    # ---- plain-JAX reference (same semantics as the PyTorch source) ----
    modI = jnp.ones((B, F), jnp.float32)
    modD = jnp.ones((B, F, 3), jnp.float32)
    I_ = params[:, 3][:, None, None, None]
    bg_ = params[:, 4][:, None, None, None]
    psfd = psf_deriv[..., :3] / jnp.array([pixelsize, pixelsize, 1000.0], jnp.float32)
    mu_ref = bg_ + modI[:, :, None, None] * I_ * psf_ev[:, None]
    dxyz = I_[..., None] * (modD[:, :, None, None, :] * psf_ev[:, None, :, :, None]
                            + modI[:, :, None, None, None] * psfd[:, None])
    dI = psf_ev[:, None] * modI[:, :, None, None]
    dbg_ref = jnp.ones_like(dI)
    deriv_ref = jnp.concatenate([dxyz, dI[..., None], dbg_ref[..., None]], -1)

    assert mu.shape == (B, F, My, Mx)
    assert deriv.shape == (B, F, My, Mx, 5)
    assert np.allclose(np.asarray(mu), np.asarray(mu_ref), rtol=1e-5, atol=1e-4)
    assert np.allclose(np.asarray(deriv), np.asarray(deriv_ref), rtol=1e-5, atol=1e-3)
    print("KERNEL_OK")
</pallas_src>

<mosaic_0001>
module attributes {stable_mosaic.version = 11 : i64} {
  func.func @_simflux_kernel(%arg0: i32, %arg1: memref<2x18xf32, #tpu.memory_space<vmem>>, %arg2: memref<2x256xf32, #tpu.memory_space<vmem>>, %arg3: memref<3x2x256xf32, #tpu.memory_space<vmem>>, %arg4: memref<4x2x256xf32, #tpu.memory_space<vmem>>, %arg5: memref<4x4x2x256xf32, #tpu.memory_space<vmem>>) attributes {dimension_semantics = [#tpu.dimension_semantics<parallel>], iteration_bounds = array<i64: 1>, scalar_prefetch = 0 : i64, scratch_operands = 0 : i64, tpu.core_type = #tpu.core_type<tc>, window_params = [{transform_indices = @transform_0, window_bounds = array<i64: 2, 18>}, {transform_indices = @transform_1, window_bounds = array<i64: 2, 256>}, {transform_indices = @transform_2, window_bounds = array<i64: 3, 2, 256>}, {transform_indices = @transform_3, window_bounds = array<i64: 4, 2, 256>}, {transform_indices = @transform_4, window_bounds = array<i64: 4, 4, 2, 256>}]} {
    %c0 = arith.constant 0 : index
    %c0_0 = arith.constant 0 : index
    %0 = vector.load %arg2[%c0, %c0_0] : memref<2x256xf32, #tpu.memory_space<vmem>>, vector<2x256xf32>
    %c0_1 = arith.constant 0 : index
    %c0_2 = arith.constant 0 : index
    %1 = vector.load %arg1[%c0_1, %c0_2] : memref<2x18xf32, #tpu.memory_space<vmem>>, vector<2x1xf32>
    %c0_3 = arith.constant 0 : index
    %c1 = arith.constant 1 : index
    %2 = vector.load %arg1[%c0_3, %c1] : memref<2x18xf32, #tpu.memory_space<vmem>>, vector<2x1xf32>
    %3 = vector.broadcast %1 : vector<2x1xf32> to vector<2x256xf32>
    %4 = arith.mulf %3, %0 : vector<2x256xf32>
    %c0_4 = arith.constant 0 : index
    %c0_5 = arith.constant 0 : index
    %c0_6 = arith.constant 0 : index
    %5 = vector.load %arg3[%c0_4, %c0_5, %c0_6] : memref<3x2x256xf32, #tpu.memory_space<vmem>>, vector<1x2x256xf32>
    %6 = vector.shape_cast %5 : vector<1x2x256xf32> to vector<2x256xf32>
    %cst = arith.constant 0.0153846154 : f32
    %7 = vector.broadcast %cst : f32 to vector<2x256xf32>
    %8 = arith.mulf %6, %7 : vector<2x256xf32>
    %9 = vector.broadcast %1 : vector<2x1xf32> to vector<2x256xf32>
    %10 = arith.mulf %9, %8 : vector<2x256xf32>
    %c1_7 = arith.constant 1 : index
    %c0_8 = arith.constant 0 : index
    %c0_9 = arith.constant 0 : index
    %11 = vector.load %arg3[%c1_7, %c0_8, %c0_9] : memref<3x2x256xf32, #tpu.memory_space<vmem>>, vector<1x2x256xf32>
    %12 = vector.shape_cast %11 : vector<1x2x256xf32> to vector<2x256xf32>
    %cst_10 = arith.constant 0.0153846154 : f32
    %13 = vector.broadcast %cst_10 : f32 to vector<2x256xf32>
    %14 = arith.mulf %12, %13 : vector<2x256xf32>
    %15 = vector.broadcast %1 : vector<2x1xf32> to vector<2x256xf32>
    %16 = arith.mulf %15, %14 : vector<2x256xf32>
    %c2 = arith.constant 2 : index
    %c0_11 = arith.constant 0 : index
    %c0_12 = arith.constant 0 : index
    %17 = vector.load %arg3[%c2, %c0_11, %c0_12] : memref<3x2x256xf32, #tpu.memory_space<vmem>>, vector<1x2x256xf32>
    %18 = vector.shape_cast %17 : vector<1x2x256xf32> to vector<2x256xf32>
    %cst_13 = arith.constant 1.000000e-03 : f32
    %19 = vector.broadcast %cst_13 : f32 to vector<2x256xf32>
    %20 = arith.mulf %18, %19 : vector<2x256xf32>
    %21 = vector.broadcast %1 : vector<2x1xf32> to vector<2x256xf32>
    %22 = arith.mulf %21, %20 : vector<2x256xf32>
    %c0_14 = arith.constant 0 : index
    %c2_15 = arith.constant 2 : index
    %23 = vector.load %arg1[%c0_14, %c2_15] : memref<2x18xf32, #tpu.memory_space<vmem>>, vector<2x1xf32>
    %24 = vector.broadcast %23 : vector<2x1xf32> to vector<2x256xf32>
    %25 = arith.mulf %24, %4 : vector<2x256xf32>
    %26 = vector.broadcast %2 : vector<2x1xf32> to vector<2x256xf32>
    %27 = arith.addf %26, %25 : vector<2x256xf32>
    %c0_16 = arith.constant 0 : index
    %c0_17 = arith.constant 0 : index
    %c0_18 = arith.constant 0 : index
    %28 = vector.load %arg4[%c0_16, %c0_17, %c0_18] : memref<4x2x256xf32, #tpu.memory_space<vmem>>, vector<1x2x256xf32>
    %29 = vector.shape_cast %28 : vector<1x2x256xf32> to vector<2x256xf32>
    %30 = vector.shape_cast %27 : vector<2x256xf32> to vector<1x2x256xf32>
    tpu.vector_store %arg4[%c0_16, %c0_17, %c0_18], %30 {strides = array<i32>} : memref<4x2x256xf32, #tpu.memory_space<vmem>>, vector<1x2x256xf32>,
    %31 = vector.broadcast %23 : vector<2x1xf32> to vector<2x256xf32>
    %32 = arith.mulf %31, %0 : vector<2x256xf32>
    %c3 = arith.constant 3 : index
    %c0_19 = arith.constant 0 : index
    %c0_20 = arith.constant 0 : index
    %c0_21 = arith.constant 0 : index
    %33 = vector.load %arg5[%c3, %c0_19, %c0_20, %c0_21] : memref<4x4x2x256xf32, #tpu.memory_space<vmem>>, vector<1x1x2x256xf32>
    %34 = vector.shape_cast %33 : vector<1x1x2x256xf32> to vector<2x256xf32>
    %35 = vector.shape_cast %32 : vector<2x256xf32> to vector<1x1x2x256xf32>
    tpu.vector_store %arg5[%c3, %c0_19, %c0_20, %c0_21], %35 {strides = array<i32>} : memref<4x4x2x256xf32, #tpu.memory_space<vmem>>, vector<1x1x2x256xf32>,
    %c0_22 = arith.constant 0 : index
    %c6 = arith.constant 6 : index
    %36 = vector.load %arg1[%c0_22, %c6] : memref<2x18xf32, #tpu.memory_space<vmem>>, vector<2x1xf32>
    %37 = vector.broadcast %36 : vector<2x1xf32> to vector<2x256xf32>
    %38 = arith.mulf %37, %4 : vector<2x256xf32>
    %39 = vector.broadcast %23 : vector<2x1xf32> to vector<2x256xf32>
    %40 = arith.mulf %39, %10 : vector<2x256xf32>
    %41 = arith.addf %38, %40 : vector<2x256xf32>
    %c0_23 = arith.constant 0 : index
    %c0_24 = arith.constant 0 : index
    %c0_25 = arith.constant 0 : index
    %c0_26 = arith.constant 0 : index
    %42 = vector.load %arg5[%c0_23, %c0_24, %c0_25, %c0_26] : memref<4x4x2x256xf32, #tpu.memory_space<vmem>>, vector<1x1x2x256xf32>
    %43 = vector.shape_cast %42 : vector<1x1x2x256xf32> to vector<2x256xf32>
    %44 = vector.shape_cast %41 : vector<2x256xf32> to vector<1x1x2x256xf32>
    tpu.vector_store %arg5[%c0_23, %c0_24, %c0_25, %c0_26], %44 {strides = array<i32>} : memref<4x4x2x256xf32, #tpu.memory_space<vmem>>, vector<1x1x2x256xf32>,
    %c0_27 = arith.constant 0 : index
    %c10 = arith.constant 10 : index
    %45 = vector.load %arg1[%c0_27, %c10] : memref<2x18xf32, #tpu.memory_space<vmem>>, vector<2x1xf32>
    %46 = vector.broadcast %45 : vector<2x1xf32> to vector<2x256xf32>
    %47 = arith.mulf %46, %4 : vector<2x256xf32>
    %48 = vector.broadcast %23 : vector<2x1xf32> to vector<2x256xf32>
    %49 = arith.mulf %48, %16 : vector<2x256xf32>
    %50 = arith.addf %47, %49 : vector<2x256xf32>
    %c1_28 = arith.constant 1 : index
    %c0_29 = arith.constant 0 : index
    %c0_30 = arith.constant 0 : index
    %c0_31 = arith.constant 0 : index
    %51 = vector.load %arg5[%c1_28, %c0_29, %c0_30, %c0_31] : memref<4x4x2x256xf32, #tpu.memory_space<vmem>>, vector<1x1x2x256xf32>
    %52 = vector.shape_cast %51 : vector<1x1x2x256xf32> to vector<2x256xf32>
    %53 = vector.shape_cast %50 : vector<2x256xf32> to vector<1x1x2x256xf32>
    tpu.vector_store %arg5[%c1_28, %c0_29, %c0_30, %c0_31], %53 {strides = array<i32>} : memref<4x4x2x256xf32, #tpu.memory_space<vmem>>, vector<1x1x2x256xf32>,
    %c0_32 = arith.constant 0 : index
    %c14 = arith.constant 14 : index
    %54 = vector.load %arg1[%c0_32, %c14] : memref<2x18xf32, #tpu.memory_space<vmem>>, vector<2x1xf32>
    %55 = vector.broadcast %54 : vector<2x1xf32> to vector<2x256xf32>
    %56 = arith.mulf %55, %4 : vector<2x256xf32>
    %57 = vector.broadcast %23 : vector<2x1xf32> to vector<2x256xf32>
    %58 = arith.mulf %57, %22 : vector<2x256xf32>
    %59 = arith.addf %56, %58 : vector<2x256xf32>
    %c2_33 = arith.constant 2 : index
    %c0_34 = arith.constant 0 : index
    %c0_35 = arith.constant 0 : index
    %c0_36 = arith.constant 0 : index
    %60 = vector.load %arg5[%c2_33, %c0_34, %c0_35, %c0_36] : memref<4x4x2x256xf32, #tpu.memory_space<vmem>>, vector<1x1x2x256xf32>
    %61 = vector.shape_cast %60 : vector<1x1x2x256xf32> to vector<2x256xf32>
    %62 = vector.shape_cast %59 : vector<2x256xf32> to vector<1x1x2x256xf32>
    tpu.vector_store %arg5[%c2_33, %c0_34, %c0_35, %c0_36], %62 {strides = array<i32>} : memref<4x4x2x256xf32, #tpu.memory_space<vmem>>, vector<1x1x2x256xf32>,
    %c0_37 = arith.constant 0 : index
    %c3_38 = arith.constant 3 : index
    %63 = vector.load %arg1[%c0_37, %c3_38] : memref<2x18xf32, #tpu.memory_space<vmem>>, vector<2x1xf32>
    %64 = vector.broadcast %63 : vector<2x1xf32> to vector<2x256xf32>
    %65 = arith.mulf %64, %4 : vector<2x256xf32>
    %66 = vector.broadcast %2 : vector<2x1xf32> to vector<2x256xf32>
    %67 = arith.addf %66, %65 : vector<2x256xf32>
    %c1_39 = arith.constant 1 : index
    %c0_40 = arith.constant 0 : index
    %c0_41 = arith.constant 0 : index
    %68 = vector.load %arg4[%c1_39, %c0_40, %c0_41] : memref<4x2x256xf32, #tpu.memory_space<vmem>>, vector<1x2x256xf32>
    %69 = vector.shape_cast %68 : vector<1x2x256xf32> to vector<2x256xf32>
    %70 = vector.shape_cast %67 : vector<2x256xf32> to vector<1x2x256xf32>
    tpu.vector_store %arg4[%c1_39, %c0_40, %c0_41], %70 {strides = array<i32>} : memref<4x2x256xf32, #tpu.memory_space<vmem>>, vector<1x2x256xf32>,
    %71 = vector.broadcast %63 : vector<2x1xf32> to vector<2x256xf32>
    %72 = arith.mulf %71, %0 : vector<2x256xf32>
    %c3_42 = arith.constant 3 : index
    %c1_43 = arith.constant 1 : index
    %c0_44 = arith.constant 0 : index
    %c0_45 = arith.constant 0 : index
    %73 = vector.load %arg5[%c3_42, %c1_43, %c0_44, %c0_45] : memref<4x4x2x256xf32, #tpu.memory_space<vmem>>, vector<1x1x2x256xf32>
    %74 = vector.shape_cast %73 : vector<1x1x2x256xf32> to vector<2x256xf32>
    %75 = vector.shape_cast %72 : vector<2x256xf32> to vector<1x1x2x256xf32>
    tpu.vector_store %arg5[%c3_42, %c1_43, %c0_44, %c0_45], %75 {strides = array<i32>} : memref<4x4x2x256xf32, #tpu.memory_space<vmem>>, vector<1x1x2x256xf32>,
    %c0_46 = arith.constant 0 : index
    %c7 = arith.constant 7 : index
    %76 = vector.load %arg1[%c0_46, %c7] : memref<2x18xf32, #tpu.memory_space<vmem>>, vector<2x1xf32>
    %77 = vector.broadcast %76 : vector<2x1xf32> to vector<2x256xf32>
    %78 = arith.mulf %77, %4 : vector<2x256xf32>
    %79 = vector.broadcast %63 : vector<2x1xf32> to vector<2x256xf32>
    %80 = arith.mulf %79, %10 : vector<2x256xf32>
    %81 = arith.addf %78, %80 : vector<2x256xf32>
    %c0_47 = arith.constant 0 : index
    %c1_48 = arith.constant 1 : index
    %c0_49 = arith.constant 0 : index
    %c0_50 = arith.constant 0 : index
    %82 = vector.load %arg5[%c0_47, %c1_48, %c0_49, %c0_50] : memref<4x4x2x256xf32, #tpu.memory_space<vmem>>, vector<1x1x2x256xf32>
    %83 = vector.shape_cast %82 : vector<1x1x2x256xf32> to vector<2x256xf32>
    %84 = vector.shape_cast %81 : vector<2x256xf32> to vector<1x1x2x256xf32>
    tpu.vector_store %arg5[%c0_47, %c1_48, %c0_49, %c0_50], %84 {strides = array<i32>} : memref<4x4x2x256xf32, #tpu.memory_space<vmem>>, vector<1x1x2x256xf32>,
    %c0_51 = arith.constant 0 : index
    %c11 = arith.constant 11 : index
    %85 = vector.load %arg1[%c0_51, %c11] : memref<2x18xf32, #tpu.memory_space<vmem>>, vector<2x1xf32>
    %86 = vector.broadcast %85 : vector<2x1xf32> to vector<2x256xf32>
    %87 = arith.mulf %86, %4 : vector<2x256xf32>
    %88 = vector.broadcast %63 : vector<2x1xf32> to vector<2x256xf32>
    %89 = arith.mulf %88, %16 : vector<2x256xf32>
    %90 = arith.addf %87, %89 : vector<2x256xf32>
    %c1_52 = arith.constant 1 : index
    %c1_53 = arith.constant 1 : index
    %c0_54 = arith.constant 0 : index
    %c0_55 = arith.constant 0 : index
    %91 = vector.load %arg5[%c1_52, %c1_53, %c0_54, %c0_55] : memref<4x4x2x256xf32, #tpu.memory_space<vmem>>, vector<1x1x2x256xf32>
    %92 = vector.shape_cast %91 : vector<1x1x2x256xf32> to vector<2x256xf32>
    %93 = vector.shape_cast %90 : vector<2x256xf32> to vector<1x1x2x256xf32>
    tpu.vector_store %arg5[%c1_52, %c1_53, %c0_54, %c0_55], %93 {strides = array<i32>} : memref<4x4x2x256xf32, #tpu.memory_space<vmem>>, vector<1x1x2x256xf32>,
    %c0_56 = arith.constant 0 : index
    %c15 = arith.constant 15 : index
    %94 = vector.load %arg1[%c0_56, %c15] : memref<2x18xf32, #tpu.memory_space<vmem>>, vector<2x1xf32>
    %95 = vector.broadcast %94 : vector<2x1xf32> to vector<2x256xf32>
    %96 = arith.mulf %95, %4 : vector<2x256xf32>
    %97 = vector.broadcast %63 : vector<2x1xf32> to vector<2x256xf32>
    %98 = arith.mulf %97, %22 : vector<2x256xf32>
    %99 = arith.addf %96, %98 : vector<2x256xf32>
    %c2_57 = arith.constant 2 : index
    %c1_58 = arith.constant 1 : index
    %c0_59 = arith.constant 0 : index
    %c0_60 = arith.constant 0 : index
    %100 = vector.load %arg5[%c2_57, %c1_58, %c0_59, %c0_60] : memref<4x4x2x256xf32, #tpu.memory_space<vmem>>, vector<1x1x2x256xf32>
    %101 = vector.shape_cast %100 : vector<1x1x2x256xf32> to vector<2x256xf32>
    %102 = vector.shape_cast %99 : vector<2x256xf32> to vector<1x1x2x256xf32>
    tpu.vector_store %arg5[%c2_57, %c1_58, %c0_59, %c0_60], %102 {strides = array<i32>} : memref<4x4x2x256xf32, #tpu.memory_space<vmem>>, vector<1x1x2x256xf32>,
    %c0_61 = arith.constant 0 : index
    %c4 = arith.constant 4 : index
    %103 = vector.load %arg1[%c0_61, %c4] : memref<2x18xf32, #tpu.memory_space<vmem>>, vector<2x1xf32>
    %104 = vector.broadcast %103 : vector<2x1xf32> to vector<2x256xf32>
    %105 = arith.mulf %104, %4 : vector<2x256xf32>
    %106 = vector.broadcast %2 : vector<2x1xf32> to vector<2x256xf32>
    %107 = arith.addf %106, %105 : vector<2x256xf32>
    %c2_62 = arith.constant 2 : index
    %c0_63 = arith.constant 0 : index
    %c0_64 = arith.constant 0 : index
    %108 = vector.load %arg4[%c2_62, %c0_63, %c0_64] : memref<4x2x256xf32, #tpu.memory_space<vmem>>, vector<1x2x256xf32>
    %109 = vector.shape_cast %108 : vector<1x2x256xf32> to vector<2x256xf32>
    %110 = vector.shape_cast %107 : vector<2x256xf32> to vector<1x2x256xf32>
    tpu.vector_store %arg4[%c2_62, %c0_63, %c0_64], %110 {strides = array<i32>} : memref<4x2x256xf32, #tpu.memory_space<vmem>>, vector<1x2x256xf32>,
    %111 = vector.broadcast %103 : vector<2x1xf32> to vector<2x256xf32>
    %112 = arith.mulf %111, %0 : vector<2x256xf32>
    %c3_65 = arith.constant 3 : index
    %c2_66 = arith.constant 2 : index
    %c0_67 = arith.constant 0 : index
    %c0_68 = arith.constant 0 : index
    %113 = vector.load %arg5[%c3_65, %c2_66, %c0_67, %c0_68] : memref<4x4x2x256xf32, #tpu.memory_space<vmem>>, vector<1x1x2x256xf32>
    %114 = vector.shape_cast %113 : vector<1x1x2x256xf32> to vector<2x256xf32>
    %115 = vector.shape_cast %112 : vector<2x256xf32> to vector<1x1x2x256xf32>
    tpu.vector_store %arg5[%c3_65, %c2_66, %c0_67, %c0_68], %115 {strides = array<i32>} : memref<4x4x2x256xf32, #tpu.memory_space<vmem>>, vector<1x1x2x256xf32>,
    %c0_69 = arith.constant 0 : index
    %c8 = arith.constant 8 : index
    %116 = vector.load %arg1[%c0_69, %c8] : memref<2x18xf32, #tpu.memory_space<vmem>>, vector<2x1xf32>
    %117 = vector.broadcast %116 : vector<2x1xf32> to vector<2x256xf32>
    %118 = arith.mulf %117, %4 : vector<2x256xf32>
    %119 = vector.broadcast %103 : vector<2x1xf32> to vector<2x256xf32>
    %120 = arith.mulf %119, %10 : vector<2x256xf32>
    %121 = arith.addf %118, %120 : vector<2x256xf32>
    %c0_70 = arith.constant 0 : index
    %c2_71 = arith.constant 2 : index
    %c0_72 = arith.constant 0 : index
    %c0_73 = arith.constant 0 : index
    %122 = vector.load %arg5[%c0_70, %c2_71, %c0_72, %c0_73] : memref<4x4x2x256xf32, #tpu.memory_space<vmem>>, vector<1x1x2x256xf32>
    %123 = vector.shape_cast %122 : vector<1x1x2x256xf32> to vector<2x256xf32>
    %124 = vector.shape_cast %121 : vector<2x256xf32> to vector<1x1x2x256xf32>
    tpu.vector_store %arg5[%c0_70, %c2_71, %c0_72, %c0_73], %124 {strides = array<i32>} : memref<4x4x2x256xf32, #tpu.memory_space<vmem>>, vector<1x1x2x256xf32>,
    %c0_74 = arith.constant 0 : index
    %c12 = arith.constant 12 : index
    %125 = vector.load %arg1[%c0_74, %c12] : memref<2x18xf32, #tpu.memory_space<vmem>>, vector<2x1xf32>
    %126 = vector.broadcast %125 : vector<2x1xf32> to vector<2x256xf32>
    %127 = arith.mulf %126, %4 : vector<2x256xf32>
    %128 = vector.broadcast %103 : vector<2x1xf32> to vector<2x256xf32>
    %129 = arith.mulf %128, %16 : vector<2x256xf32>
    %130 = arith.addf %127, %129 : vector<2x256xf32>
    %c1_75 = arith.constant 1 : index
    %c2_76 = arith.constant 2 : index
    %c0_77 = arith.constant 0 : index
    %c0_78 = arith.constant 0 : index
    %131 = vector.load %arg5[%c1_75, %c2_76, %c0_77, %c0_78] : memref<4x4x2x256xf32, #tpu.memory_space<vmem>>, vector<1x1x2x256xf32>
    %132 = vector.shape_cast %131 : vector<1x1x2x256xf32> to vector<2x256xf32>
    %133 = vector.shape_cast %130 : vector<2x256xf32> to vector<1x1x2x256xf32>
    tpu.vector_store %arg5[%c1_75, %c2_76, %c0_77, %c0_78], %133 {strides = array<i32>} : memref<4x4x2x256xf32, #tpu.memory_space<vmem>>, vector<1x1x2x256xf32>,
    %c0_79 = arith.constant 0 : index
    %c16 = arith.constant 16 : index
    %134 = vector.load %arg1[%c0_79, %c16] : memref<2x18xf32, #tpu.memory_space<vmem>>, vector<2x1xf32>
    %135 = vector.broadcast %134 : vector<2x1xf32> to vector<2x256xf32>
    %136 = arith.mulf %135, %4 : vector<2x256xf32>
    %137 = vector.broadcast %103 : vector<2x1xf32> to vector<2x256xf32>
    %138 = arith.mulf %137, %22 : vector<2x256xf32>
    %139 = arith.addf %136, %138 : vector<2x256xf32>
    %c2_80 = arith.constant 2 : index
    %c2_81 = arith.constant 2 : index
    %c0_82 = arith.constant 0 : index
    %c0_83 = arith.constant 0 : index
    %140 = vector.load %arg5[%c2_80, %c2_81, %c0_82, %c0_83] : memref<4x4x2x256xf32, #tpu.memory_space<vmem>>, vector<1x1x2x256xf32>
    %141 = vector.shape_cast %140 : vector<1x1x2x256xf32> to vector<2x256xf32>
    %142 = vector.shape_cast %139 : vector<2x256xf32> to vector<1x1x2x256xf32>
    tpu.vector_store %arg5[%c2_80, %c2_81, %c0_82, %c0_83], %142 {strides = array<i32>} : memref<4x4x2x256xf32, #tpu.memory_space<vmem>>, vector<1x1x2x256xf32>,
    %c0_84 = arith.constant 0 : index
    %c5 = arith.constant 5 : index
    %143 = vector.load %arg1[%c0_84, %c5] : memref<2x18xf32, #tpu.memory_space<vmem>>, vector<2x1xf32>
    %144 = vector.broadcast %143 : vector<2x1xf32> to vector<2x256xf32>
    %145 = arith.mulf %144, %4 : vector<2x256xf32>
    %146 = vector.broadcast %2 : vector<2x1xf32> to vector<2x256xf32>
    %147 = arith.addf %146, %145 : vector<2x256xf32>
    %c3_85 = arith.constant 3 : index
    %c0_86 = arith.constant 0 : index
    %c0_87 = arith.constant 0 : index
    %148 = vector.load %arg4[%c3_85, %c0_86, %c0_87] : memref<4x2x256xf32, #tpu.memory_space<vmem>>, vector<1x2x256xf32>
    %149 = vector.shape_cast %148 : vector<1x2x256xf32> to vector<2x256xf32>
    %150 = vector.shape_cast %147 : vector<2x256xf32> to vector<1x2x256xf32>
    tpu.vector_store %arg4[%c3_85, %c0_86, %c0_87], %150 {strides = array<i32>} : memref<4x2x256xf32, #tpu.memory_space<vmem>>, vector<1x2x256xf32>,
    %151 = vector.broadcast %143 : vector<2x1xf32> to vector<2x256xf32>
    %152 = arith.mulf %151, %0 : vector<2x256xf32>
    %c3_88 = arith.constant 3 : index
    %c3_89 = arith.constant 3 : index
    %c0_90 = arith.constant 0 : index
    %c0_91 = arith.constant 0 : index
    %153 = vector.load %arg5[%c3_88, %c3_89, %c0_90, %c0_91] : memref<4x4x2x256xf32, #tpu.memory_space<vmem>>, vector<1x1x2x256xf32>
    %154 = vector.shape_cast %153 : vector<1x1x2x256xf32> to vector<2x256xf32>
    %155 = vector.shape_cast %152 : vector<2x256xf32> to vector<1x1x2x256xf32>
    tpu.vector_store %arg5[%c3_88, %c3_89, %c0_90, %c0_91], %155 {strides = array<i32>} : memref<4x4x2x256xf32, #tpu.memory_space<vmem>>, vector<1x1x2x256xf32>,
    %c0_92 = arith.constant 0 : index
    %c9 = arith.constant 9 : index
    %156 = vector.load %arg1[%c0_92, %c9] : memref<2x18xf32, #tpu.memory_space<vmem>>, vector<2x1xf32>
    %157 = vector.broadcast %156 : vector<2x1xf32> to vector<2x256xf32>
    %158 = arith.mulf %157, %4 : vector<2x256xf32>
    %159 = vector.broadcast %143 : vector<2x1xf32> to vector<2x256xf32>
    %160 = arith.mulf %159, %10 : vector<2x256xf32>
    %161 = arith.addf %158, %160 : vector<2x256xf32>
    %c0_93 = arith.constant 0 : index
    %c3_94 = arith.constant 3 : index
    %c0_95 = arith.constant 0 : index
    %c0_96 = arith.constant 0 : index
    %162 = vector.load %arg5[%c0_93, %c3_94, %c0_95, %c0_96] : memref<4x4x2x256xf32, #tpu.memory_space<vmem>>, vector<1x1x2x256xf32>
    %163 = vector.shape_cast %162 : vector<1x1x2x256xf32> to vector<2x256xf32>
    %164 = vector.shape_cast %161 : vector<2x256xf32> to vector<1x1x2x256xf32>
    tpu.vector_store %arg5[%c0_93, %c3_94, %c0_95, %c0_96], %164 {strides = array<i32>} : memref<4x4x2x256xf32, #tpu.memory_space<vmem>>, vector<1x1x2x256xf32>,
    %c0_97 = arith.constant 0 : index
    %c13 = arith.constant 13 : index
    %165 = vector.load %arg1[%c0_97, %c13] : memref<2x18xf32, #tpu.memory_space<vmem>>, vector<2x1xf32>
    %166 = vector.broadcast %165 : vector<2x1xf32> to vector<2x256xf32>
    %167 = arith.mulf %166, %4 : vector<2x256xf32>
    %168 = vector.broadcast %143 : vector<2x1xf32> to vector<2x256xf32>
    %169 = arith.mulf %168, %16 : vector<2x256xf32>
    %170 = arith.addf %167, %169 : vector<2x256xf32>
    %c1_98 = arith.constant 1 : index
    %c3_99 = arith.constant 3 : index
    %c0_100 = arith.constant 0 : index
    %c0_101 = arith.constant 0 : index
    %171 = vector.load %arg5[%c1_98, %c3_99, %c0_100, %c0_101] : memref<4x4x2x256xf32, #tpu.memory_space<vmem>>, vector<1x1x2x256xf32>
    %172 = vector.shape_cast %171 : vector<1x1x2x256xf32> to vector<2x256xf32>
    %173 = vector.shape_cast %170 : vector<2x256xf32> to vector<1x1x2x256xf32>
    tpu.vector_store %arg5[%c1_98, %c3_99, %c0_100, %c0_101], %173 {strides = array<i32>} : memref<4x4x2x256xf32, #tpu.memory_space<vmem>>, vector<1x1x2x256xf32>,
    %c0_102 = arith.constant 0 : index
    %c17 = arith.constant 17 : index
    %174 = vector.load %arg1[%c0_102, %c17] : memref<2x18xf32, #tpu.memory_space<vmem>>, vector<2x1xf32>
    %175 = vector.broadcast %174 : vector<2x1xf32> to vector<2x256xf32>
    %176 = arith.mulf %175, %4 : vector<2x256xf32>
    %177 = vector.broadcast %143 : vector<2x1xf32> to vector<2x256xf32>
    %178 = arith.mulf %177, %22 : vector<2x256xf32>
    %179 = arith.addf %176, %178 : vector<2x256xf32>
    %c2_103 = arith.constant 2 : index
    %c3_104 = arith.constant 3 : index
    %c0_105 = arith.constant 0 : index
    %c0_106 = arith.constant 0 : index
    %180 = vector.load %arg5[%c2_103, %c3_104, %c0_105, %c0_106] : memref<4x4x2x256xf32, #tpu.memory_space<vmem>>, vector<1x1x2x256xf32>
    %181 = vector.shape_cast %180 : vector<1x1x2x256xf32> to vector<2x256xf32>
    %182 = vector.shape_cast %179 : vector<2x256xf32> to vector<1x1x2x256xf32>
    tpu.vector_store %arg5[%c2_103, %c3_104, %c0_105, %c0_106], %182 {strides = array<i32>} : memref<4x4x2x256xf32, #tpu.memory_space<vmem>>, vector<1x1x2x256xf32>,
    return
  }
  func.func @transform_0(%arg0: i32) -> (i32, i32) {
    %c0_i32 = arith.constant 0 : i32
    %c0_i32_0 = arith.constant 0 : i32
    return %arg0, %c0_i32 : i32, i32
  }
  func.func @transform_1(%arg0: i32) -> (i32, i32) {
    %c0_i32 = arith.constant 0 : i32
    %c0_i32_0 = arith.constant 0 : i32
    return %arg0, %c0_i32 : i32, i32
  }
  func.func @transform_2(%arg0: i32) -> (i32, i32, i32) {
    %c0_i32 = arith.constant 0 : i32
    %c0_i32_0 = arith.constant 0 : i32
    %c0_i32_1 = arith.constant 0 : i32
    return %c0_i32, %arg0, %c0_i32_0 : i32, i32, i32
  }
  func.func @transform_3(%arg0: i32) -> (i32, i32, i32) {
    %c0_i32 = arith.constant 0 : i32
    %c0_i32_0 = arith.constant 0 : i32
    %c0_i32_1 = arith.constant 0 : i32
    return %c0_i32, %arg0, %c0_i32_0 : i32, i32, i32
  }
  func.func @transform_4(%arg0: i32) -> (i32, i32, i32, i32) {
    %c0_i32 = arith.constant 0 : i32
    %c0_i32_0 = arith.constant 0 : i32
    %c0_i32_1 = arith.constant 0 : i32
    %c0_i32_2 = arith.constant 0 : i32
    return %c0_i32, %c0_i32_0, %arg0, %c0_i32_1 : i32, i32, i32, i32
  }
}

</mosaic_0001>

<bundles_post_ra>
// kernel: tpu_custom_call.1
= control target key start
LH: loop header
LB: loop body
LE: loop exit
PB: predicated region body
PF: predicated region fallthrough
CT: control target
= control target key end

     0   :  { %10 = vsyncpa [#allocation3], 0  ;;  %s874_s0 = inlined_call_operand.hbm [shape: f32[2,18], index: 0, kind: input, shape index: {}]   ;;  %s875_s1 = inlined_call_operand.hbm [shape: f32[2,256], index: 1, kind: input, shape index: {}]   ;;  %s876_s2 = inlined_call_operand.hbm [shape: f32[3,2,256], index: 2, kind: input, shape index: {}]   ;;  %s877_s3 = inlined_call_operand.hbm [shape: f32[4,2,256], index: 3, kind: output, shape index: {0}]   ;;  %s878_s4 = inlined_call_operand.hbm [shape: f32[4,4,2,256], index: 4, kind: output, shape index: {1}]  }
   0x1   :  { %11 = vsyncpa [#allocation6], 0 }
   0x2   :  { %12 = vsyncpa [#allocation4], 0  ;;  %s30_s17 = sshll.u32 %s875_s1, 4  ;;  %s31_s17 = int_to_ptr.hbm [resolvable:$true] %s30_s17 }
   0x3   :  { %13 = vsyncpa [#allocation10], 0  ;;  %s673_s18 = smov [#allocation5]   ;;  %s19_s22 = sshll.u32 %s874_s0, 4  ;;  %s20_s22 = int_to_ptr.hbm [resolvable:$true] %s19_s22 }
   0x4   :  { %s32_s19 = sshll.u32 %s673_s18, 4  ;;  %s674_s23 = smov [#allocation2]   ;;  %s33_s19 = int_to_ptr.vmem [resolvable:$true] %s32_s19 }
   0x5   :  { %35 = dma.hbm_to_vmem [thread:$0]  %s31_s17, 64, %s33_s19, [#allocation6]  }
   0x6   :  { %s21_s24 = sshll.u32 %s674_s23, 4  ;;  %s40_s27 = sshll.u32 %s876_s2, 4  ;;  %s22_s24 = int_to_ptr.vmem [resolvable:$true] %s21_s24  ;;  %s41_s27 = int_to_ptr.hbm [resolvable:$true] %s40_s27 }
   0x7   :  { %24 = dma.hbm_to_vmem [thread:$0]  %s20_s22, 32, %s22_s24, [#allocation3]  }
   0x8   :  { %s675_s1 = smov [#allocation7]   ;;  %s676_s29 = smov 64  }
   0x9   :  { %s42_s28 = sshll.u32 %s675_s1, 4  ;;  %s677_s30 = smov 4   ;;  %s43_s28 = int_to_ptr.vmem [resolvable:$true] %s42_s28 }
   0xa   :  { %48 = dma.hbm_to_vmem [thread:$0]  %s41_s27, 192, %s43_s28, [#allocation6], %s676_s29, %s676_s29, %s677_s30  }
   0xb   :  { %665 = dma.done.wait [#allocation3], 32  }
   0xc   :  { %666 = vsyncadd [#allocation3], 4294967264 }
   0xd   :  { %667 = dma.done.wait [#allocation6], 256  }
   0xe   :  { %668 = vsyncadd [#allocation6], 4294967040  ;;  %v678_v0 = vmov 10   ;;  %v679_v1 = vmov 1   ;;  %v680_v2 = vmov 0   ;;  %v681_v8 = vmov 14  }
   0xf   :  { %530 = vset.pattern.permute.xlu2 %v678_v0  ;;  %528 = vset.pattern.permute.xlu1 %v679_v1  ;;  %v161_v3 = vld [vmem:[#allocation2] sm:$0x3]  ;;  %v682_v9 = vmov 6   ;;  %v683_v10 = vmov 2   ;;  %v684_v13 = vmov 7   ;;  %v685_v15 = vmov 3  }
  0x10   :  { %526 = vset.pattern.permute.xlu0 %v680_v2  ;;  %v62_v4 = vld [vmem:[#allocation2] sm:$0x3]  ;;  %164 = vperm.xlu2 %530, %v161_v3   ;;  %v686_v16 = vmov 11   ;;  %v687_v20 = vmov 4   ;;  %v688_v21 = vmov 15   ;;  %v689_v22 = vmov 16  }
  0x11   :  { %117 = vperm.xlu1 %528, %v62_v4   ;;  %65 = vperm.xlu0 %526, %v62_v4   ;;  %v180_v5 = vld [vmem:[#allocation2] sm:$0x3]  ;;  %v690_v25 = vmov 12   ;;  %v691_v26 = vmov 8   ;;  %v692_v27 = vmov 17   ;;  %v693_v30 = vmov 9  }
  0x12   :  { %v143_v6 = vld [vmem:[#allocation2] sm:$0x3]  ;;  %v694_v31 = vmov 5   ;;  %v61_v34 = vld [vmem:[#allocation5] sm:$0xf]  ;;  %v695_v35 = vmov 13  }
  0x13   :  { %v108_v7 = vld [vmem:[#allocation2] sm:$0x3]  ;;  %69 = vst [vmem:[#allocation1] ss:$4 sm:$0xff] %v61_v34  ;;  %v76_v36 = vld [vmem:[#allocation7] sm:$0xf] }
  0x14   :  { %v230_v11 = vld [vmem:[#allocation2] sm:$0x3]  ;;  %v77_v37 = vmul.f32 0.015384615, %v76_v36  ;;  %v87_v40 = vld [vmem:[#allocation7 + $0x4] sm:$0xf] }
  0x15   :  { %v199_v12 = vld [vmem:[#allocation2] sm:$0x3]  ;;  %v88_v41 = vmul.f32 0.015384615, %v87_v40  ;;  %v98_v44 = vld [vmem:[#allocation7 + $0x8] sm:$0xf] }
  0x16   :  { %v249_v14 = vld [vmem:[#allocation2] sm:$0x3]  ;;  %v99_v45 = vmul.f32 0.001, %v98_v44  ;;  %vm125_vm0 = vcmask 1041408   ;;  %s696_s0 = smov [#allocation8]  }
  0x17   :  { %v287_v17 = vld [vmem:[#allocation2] sm:$0x3]  ;;  %s467_s2 = sshll.u32 %s696_s0, 4  ;;  %s469_s7 = sshll.u32 %s877_s3, 4  ;;  %s468_s2 = int_to_ptr.vmem [resolvable:$true] %s467_s2  ;;  %s470_s7 = int_to_ptr.hbm [resolvable:$true] %s469_s7 }
  0x18   :  { %531 = vset.pattern.permute.xlu2 %v681_v8  ;;  %v268_v18 = vld [vmem:[#allocation2] sm:$0x3]  ;;  %s697_s3 = smov [#allocation9]   ;;  %s482_s11 = sshll.u32 %s878_s4, 4  ;;  %s483_s11 = int_to_ptr.hbm [resolvable:$true] %s482_s11 }
  0x19   :  { %529 = vset.pattern.permute.xlu1 %v682_v9  ;;  %527 = vset.pattern.permute.xlu0 %v683_v10  ;;  %v356_v19 = vld [vmem:[#allocation2] sm:$0x3]  ;;  %s480_s8 = sshll.u32 %s697_s3, 4  ;;  %s481_s8 = int_to_ptr.vmem [resolvable:$true] %s480_s8 }
  0x1a   :  { %183 = vperm.xlu2 %531, %v180_v5   ;;  %146 = vperm.xlu1 %529, %v143_v6   ;;  %v337_v23 = vld [vmem:[#allocation2] sm:$0x3]  ;;  %v70_v38 = vld.sshfl [vmem:[#allocation1] sm:$0xff pattern:$0x73625140] }
  0x1b   :  { %111 = vperm.xlu0 %527, %v108_v7   ;;  %v318_v24 = vld [vmem:[#allocation2] sm:$0x3] }
  0x1c   :  { %v406_v28 = vld [vmem:[#allocation2] sm:$0x3] }
  0x1d   :  { %v375_v29 = vld [vmem:[#allocation2] sm:$0x3] }
  0x1e   :  { %v444_v32 = vld [vmem:[#allocation2] sm:$0x3] }
  0x1f   :  { %v425_v33 = vld [vmem:[#allocation2] sm:$0x3] }
  0x20   :  { %v71_v39 = vld.sshfl [vmem:[#allocation1 + $0x8] sm:$0xff pattern:$0x73625140] }
  0x21   :  { %79 = vst [vmem:[#allocation1] ss:$4 sm:$0xff] %v77_v37 }
  0x22   :  { %533 = vset.pattern.permute.xlu2 %v684_v13  ;;  %532 = vset.pattern.permute.xlu1 %v685_v15 }
  0x23   :  { %534 = vset.pattern.permute.xlu0 %v686_v16  ;;  %233 = vperm.xlu2 %533, %v230_v11  }
  0x24   :  { %202 = vperm.xlu1 %532, %v199_v12   ;;  %252 = vperm.xlu0 %534, %v249_v14  }
  0x28   :  { %v80_v42 = vld.sshfl [vmem:[#allocation1] sm:$0xff pattern:$0x73625140]  ;;  %v81_v43 = vld.sshfl [vmem:[#allocation1 + $0x8] sm:$0xff pattern:$0x73625140] }
  0x29   :  { %90 = vst [vmem:[#allocation1] ss:$4 sm:$0xff] %v88_v41 }
  0x2b   :  { %536 = vset.pattern.permute.xlu2 %v687_v20 }
  0x2c   :  { %535 = vset.pattern.permute.xlu1 %v688_v21  ;;  %539 = vset.pattern.permute.xlu0 %v689_v22 }
  0x2d   :  { %290 = vperm.xlu2 %536, %v287_v17   ;;  %271 = vperm.xlu1 %535, %v268_v18  }
  0x2e   :  { %359 = vperm.xlu0 %539, %v356_v19  }
  0x30   :  { %v91_v46 = vld.sshfl [vmem:[#allocation1] sm:$0xff pattern:$0x73625140]  ;;  %v92_v47 = vld.sshfl [vmem:[#allocation1 + $0x8] sm:$0xff pattern:$0x73625140] }
  0x31   :  { %101 = vst [vmem:[#allocation1] ss:$4 sm:$0xff] %v99_v45 }
  0x35   :  { %538 = vset.pattern.permute.xlu2 %v690_v25  ;;  %537 = vset.pattern.permute.xlu1 %v691_v26 }
  0x36   :  { %340 = vperm.xlu2 %538, %v337_v23   ;;  %321 = vperm.xlu1 %537, %v318_v24  }
  0x37   :  { %544 = vset.pattern.permute.xlu0 %v692_v27 }
  0x38   :  { %v102_v48 = vld.sshfl [vmem:[#allocation1] sm:$0xff pattern:$0x73625140]  ;;  %v103_v49 = vld.sshfl [vmem:[#allocation1 + $0x8] sm:$0xff pattern:$0x73625140] }
  0x39   :  { %129 = vst [vmem:[#allocation1] ss:$4 sm:$0xff] %v61_v34 }
  0x3e   :  { %541 = vset.pattern.permute.xlu2 %v693_v30  ;;  %540 = vset.pattern.permute.xlu1 %v694_v31 }
  0x3f   :  { %409 = vperm.xlu2 %541, %v406_v28   ;;  %378 = vperm.xlu1 %540, %v375_v29  }
  0x40   :  { %v130_v51 = vld.sshfl [vmem:[#allocation1] sm:$0xff pattern:$0x73625140]  ;;  %v131_v52 = vld.sshfl [vmem:[#allocation1 + $0x8] sm:$0xff pattern:$0x73625140] }
  0x41   :  { %216 = vst [vmem:[#allocation1] ss:$4 sm:$0xff] %v61_v34 }
  0x47   :  { %543 = vset.pattern.permute.xlu2 %v692_v27  ;;  %542 = vset.pattern.permute.xlu1 %v695_v35 }
  0x48   :  { %447 = vperm.xlu2 %543, %v444_v32   ;;  %428 = vperm.xlu1 %542, %v425_v33   ;;  %v735_v54 = vld.sshfl [vmem:[#allocation1] sm:$0xff pattern:$0x73625140]  ;;  %v737_v55 = vld.sshfl [vmem:[#allocation1 + $0x8] sm:$0xff pattern:$0x73625140] }
  0x49   :  { %304 = vst [vmem:[#allocation1] ss:$4 sm:$0xff] %v61_v34 }
  0x50   :  { %v305_v57 = vld.sshfl [vmem:[#allocation1] sm:$0xff pattern:$0x73625140]  ;;  %v306_v58 = vld.sshfl [vmem:[#allocation1 + $0x8] sm:$0xff pattern:$0x73625140] }
  0x51   :  { %392 = vst [vmem:[#allocation1] ss:$4 sm:$0xff] %v61_v34 }
  0x6a   :  { %v165_v50 = vpop.permute.xlu2 %164 }
  0x74   :  { %v184_v53 = vpop.permute.xlu2 %183 }
  0x7d   :  { %v739_v56 = vpop.permute.xlu2 %233 }
  0x83   :  { %v741_v59 = vpop.permute.xlu1 %117  ;;  %v66_v60 = vpop.permute.xlu0 %65 }
  0x84   :  { %v743_v61 = vmul.f32 %v71_v39, %v66_v60  ;;  %v745_v62 = vmul.f32 %v70_v38, %v66_v60  ;;  %v749_v0 = vmul.f32 %v91_v46, %v66_v60  ;;  %v751_v1 = vmul.f32 %v92_v47, %v66_v60 }
  0x85   :  { %v753_v2 = vmul.f32 %v102_v48, %v66_v60  ;;  %v755_v3 = vmul.f32 %v103_v49, %v66_v60  ;;  %v757_v4 = vmul.f32 %v80_v42, %v66_v60  ;;  %v765_v10 = vmul.f32 %v81_v43, %v66_v60 }
  0x86   :  { %v167_v7 = vmul.f32 %v165_v50, %v745_v62  ;;  %v168_v8 = vmul.f32 %v165_v50, %v743_v61  ;;  %v186_v9 = vmul.f32 %v184_v53, %v745_v62  ;;  %v187_v13 = vmul.f32 %v184_v53, %v743_v61 }
  0x87   :  { %v747_v63 = vpop.permute.xlu2 %290  ;;  %v774_v14 = vmul.f32 %v739_v56, %v745_v62 }
  0x88   :  { %v294_v5 = vmul.f32 %v747_v63, %v743_v61  ;;  %v310_v6 = vmul.f32 %v306_v58, %v747_v63  ;;  %v345_v11 = vmul.f32 %v747_v63, %v749_v0  ;;  %v346_v12 = vmul.f32 %v747_v63, %v751_v1 }
  0x89   :  { %v293_v17 = vmul.f32 %v747_v63, %v745_v62  ;;  %v309_v19 = vmul.f32 %v305_v57, %v747_v63 }
  0x8a   :  { %v296_v18 = vadd.f32 %v294_v5, %v741_v59  ;;  %v313_v20 = vrot.slane %v310_v6, 6  ;;  %v237_v5 = vmul.f32 %v739_v56, %v743_v61 }
  0x8c   :  { %v147_v15 = vpop.permute.xlu1 %146  ;;  %v299_v49 = vrot.slane %v296_v18, 6  ;;  %v314_v53 = vsel %vm125_vm0, %v309_v19, %v313_v20 }
  0x8d   :  { %v112_v16 = vpop.permute.xlu0 %111  ;;  %v149_v21 = vmul.f32 %v147_v15, %v745_v62  ;;  %v150_v22 = vmul.f32 %v147_v15, %v743_v61  ;;  %317 = vst [vmem:[#allocation9 + $0x38] sm:$0xf] %v314_v53 }
  0x8e   :  { %v169_v23 = vmul.f32 %v112_v16, %v749_v0  ;;  %v170_v24 = vmul.f32 %v112_v16, %v751_v1  ;;  %v134_v25 = vmul.f32 %v130_v51, %v112_v16  ;;  %v135_v26 = vmul.f32 %v131_v52, %v112_v16 }
  0x8f   :  { %v188_v27 = vmul.f32 %v112_v16, %v753_v2  ;;  %v189_v28 = vmul.f32 %v112_v16, %v755_v3  ;;  %v151_v32 = vmul.f32 %v112_v16, %v757_v4  ;;  %v152_v33 = vmul.f32 %v112_v16, %v765_v10 }
  0x90   :  { %v341_v29 = vpop.permute.xlu2 %340  ;;  %v171_v30 = vadd.f32 %v169_v23, %v167_v7  ;;  %v172_v31 = vadd.f32 %v170_v24, %v168_v8  ;;  %v138_v36 = vrot.slane %v135_v26, 6  ;;  %v114_v44 = vmul.f32 %v112_v16, %v745_v62 }
  0x91   :  { %v343_v34 = vmul.f32 %v341_v29, %v745_v62  ;;  %v344_v35 = vmul.f32 %v341_v29, %v743_v61  ;;  %v190_v37 = vadd.f32 %v188_v27, %v186_v9  ;;  %v191_v39 = vadd.f32 %v189_v28, %v187_v13 }
  0x92   :  { %v175_v38 = vrot.slane %v172_v31, 6  ;;  %v153_v40 = vadd.f32 %v151_v32, %v149_v21  ;;  %v154_v41 = vadd.f32 %v152_v33, %v150_v22  ;;  %v115_v45 = vmul.f32 %v112_v16, %v743_v61 }
  0x93   :  { %v347_v42 = vadd.f32 %v345_v11, %v343_v34  ;;  %v348_v43 = vadd.f32 %v346_v12, %v344_v35  ;;  %v194_v47 = vrot.slane %v191_v39, 6  ;;  %v295_v52 = vadd.f32 %v293_v17, %v741_v59 }
  0x94   :  { %v176_v46 = vsel %vm125_vm0, %v171_v30, %v175_v38  ;;  %v157_v48 = vrot.slane %v154_v41, 6  ;;  %v121_v51 = vadd.f32 %v741_v59, %v115_v45  ;;  %v120_v6 = vadd.f32 %v741_v59, %v114_v44 }
  0x95   :  { %179 = vst [vmem:[#allocation9 + $0x10] sm:$0xf] %v176_v46  ;;  %v351_v50 = vrot.slane %v348_v43, 6  ;;  %v195_v58 = vsel %vm125_vm0, %v190_v37, %v194_v47  ;;  %v300_v11 = vsel %vm125_vm0, %v295_v52, %v299_v49  ;;  %v139_v12 = vsel %vm125_vm0, %v134_v25, %v138_v36 }
  0x96   :  { %v203_v57 = vpop.permute.xlu1 %202  ;;  %v158_v60 = vsel %vm125_vm0, %v153_v40, %v157_v48  ;;  %v253_v8 = vpop.permute.xlu0 %252  ;;  %198 = vst [vmem:[#allocation9 + $0x20] sm:$0xf] %v195_v58  ;;  %v124_v18 = vrot.slane %v121_v51, 6  ;;  %v365_v35 = vmul.f32 %v747_v63, %v755_v3 }
  0x97   :  { %v352_v7 = vsel %vm125_vm0, %v347_v42, %v351_v50  ;;  %v258_v9 = vmul.f32 %v203_v57, %v751_v1  ;;  %v255_v13 = vmul.f32 %v253_v8, %v745_v62  ;;  %v256_v15 = vmul.f32 %v253_v8, %v743_v61  ;;  %160 = vst [vmem:[#allocation9] sm:$0xf] %v158_v60 }
  0x98   :  { %355 = vst [vmem:[#allocation9 + $0x18] sm:$0xf] %v352_v7  ;;  %v257_v56 = vmul.f32 %v203_v57, %v749_v0  ;;  %v238_v16 = vmul.f32 %v203_v57, %v757_v4  ;;  %v239_v17 = vmul.f32 %v203_v57, %v765_v10  ;;  %v205_v19 = vmul.f32 %v203_v57, %v745_v62 }
  0x99   :  { %v206_v20 = vmul.f32 %v203_v57, %v743_v61  ;;  %v260_v21 = vadd.f32 %v258_v9, %v256_v15  ;;  %303 = vst [vmem:[#allocation8 + $0x8] sm:$0xf] %v300_v11  ;;  %v126_v23 = vsel %vm125_vm0, %v120_v6, %v124_v18  ;;  %v222_v27 = vmul.f32 %v737_v55, %v203_v57  ;;  %v410_v51 = vpop.permute.xlu2 %409 }
  0x9a   :  { %v241_v22 = vadd.f32 %v239_v17, %v237_v5  ;;  %142 = vst [vmem:[#allocation9 + $0x30] sm:$0xf] %v139_v12  ;;  %v259_v24 = vadd.f32 %v257_v56, %v255_v13  ;;  %v240_v28 = vadd.f32 %v238_v16, %v774_v14  ;;  %v207_v30 = vadd.f32 %v205_v19, %v741_v59  ;;  %v394_v12 = vld.sshfl [vmem:[#allocation1 + $0x8] sm:$0xff pattern:$0x73625140] }
  0x9b   :  { %v263_v25 = vrot.slane %v260_v21, 6  ;;  %128 = vst [vmem:[#allocation8] sm:$0xf] %v126_v23  ;;  %v208_v26 = vadd.f32 %v206_v20, %v741_v59  ;;  %v221_v33 = vmul.f32 %v735_v54, %v203_v57  ;;  %v225_v34 = vrot.slane %v222_v27, 6 }
  0x9c   :  { %v244_v29 = vrot.slane %v241_v22, 6  ;;  %v277_v55 = vmul.f32 %v203_v57, %v755_v3  ;;  %v364_v14 = vmul.f32 %v747_v63, %v753_v2  ;;  %v276_v44 = vmul.f32 %v203_v57, %v753_v2  ;;  %v393_v56 = vld.sshfl [vmem:[#allocation1] sm:$0xff pattern:$0x73625140] }
  0x9d   :  { %v264_v31 = vsel %vm125_vm0, %v259_v24, %v263_v25  ;;  %v211_v32 = vrot.slane %v208_v26, 6  ;;  %v226_v40 = vsel %vm125_vm0, %v221_v33, %v225_v34  ;;  %v327_v57 = vmul.f32 %v747_v63, %v765_v10 }
  0x9e   :  { %267 = vst [vmem:[#allocation9 + $0x14] sm:$0xf] %v264_v31  ;;  %v245_v36 = vsel %vm125_vm0, %v240_v28, %v244_v29  ;;  %v326_v6 = vmul.f32 %v747_v63, %v757_v4  ;;  %v413_v16 = vmul.f32 %v410_v51, %v743_v61  ;;  %v412_v22 = vmul.f32 %v410_v51, %v745_v62 }
  0x9f   :  { %v272_v37 = vpop.permute.xlu1 %271  ;;  %248 = vst [vmem:[#allocation9 + $0x4] sm:$0xf] %v245_v36  ;;  %v212_v39 = vsel %vm125_vm0, %v207_v30, %v211_v32 }
  0xa0   :  { %v360_v38 = vpop.permute.xlu0 %359  ;;  %v274_v54 = vmul.f32 %v272_v37, %v745_v62  ;;  %v275_v41 = vmul.f32 %v272_v37, %v743_v61  ;;  %215 = vst [vmem:[#allocation8 + $0x4] sm:$0xf] %v212_v39 }
  0xa1   :  { %v362_v42 = vmul.f32 %v360_v38, %v745_v62  ;;  %v363_v43 = vmul.f32 %v360_v38, %v743_v61  ;;  %229 = vst [vmem:[#allocation9 + $0x34] sm:$0xf] %v226_v40 }
  0xa2   :  { %v279_v45 = vadd.f32 %v277_v55, %v275_v41  ;;  %v278_v47 = vadd.f32 %v276_v44, %v274_v54  ;;  %v448_v13 = vpop.permute.xlu2 %447 }
  0xa3   :  { %v367_v46 = vadd.f32 %v365_v35, %v363_v43  ;;  %v366_v49 = vadd.f32 %v364_v14, %v362_v42  ;;  %v451_v20 = vmul.f32 %v448_v13, %v743_v61  ;;  %v450_v26 = vmul.f32 %v448_v13, %v745_v62 }
  0xa4   :  { %v282_v48 = vrot.slane %v279_v45, 6 }
  0xa5   :  { %v370_v50 = vrot.slane %v367_v46, 6 }
  0xa6   :  { %v283_v52 = vsel %vm125_vm0, %v278_v47, %v282_v48 }
  0xa7   :  { %v371_v53 = vsel %vm125_vm0, %v366_v49, %v370_v50  ;;  %286 = vst [vmem:[#allocation9 + $0x24] sm:$0xf] %v283_v52 }
  0xa8   :  { %374 = vst [vmem:[#allocation9 + $0x28] sm:$0xf] %v371_v53  ;;  %v322_v58 = vpop.permute.xlu1 %321 }
  0xa9   :  { %v324_v60 = vmul.f32 %v322_v58, %v745_v62  ;;  %v325_v5 = vmul.f32 %v322_v58, %v743_v61 }
  0xab   :  { %v329_v7 = vadd.f32 %v327_v57, %v325_v5  ;;  %v328_v8 = vadd.f32 %v326_v6, %v324_v60 }
  0xad   :  { %v332_v9 = vrot.slane %v329_v7, 6 }
  0xaf   :  { %v333_v11 = vsel %vm125_vm0, %v328_v8, %v332_v9 }
  0xb0   :  { %336 = vst [vmem:[#allocation9 + $0x8] sm:$0xf] %v333_v11 }
  0xb1   :  { %v379_v15 = vpop.permute.xlu1 %378 }
  0xb2   :  { %v398_v17 = vmul.f32 %v394_v12, %v379_v15  ;;  %v414_v18 = vmul.f32 %v379_v15, %v757_v4  ;;  %v415_v19 = vmul.f32 %v379_v15, %v765_v10  ;;  %v452_v63 = vmul.f32 %v379_v15, %v753_v2 }
  0xb3   :  { %v453_v21 = vmul.f32 %v379_v15, %v755_v3  ;;  %v397_v23 = vmul.f32 %v393_v56, %v379_v15  ;;  %v381_v28 = vmul.f32 %v379_v15, %v745_v62  ;;  %v382_v4 = vmul.f32 %v379_v15, %v743_v61 }
  0xb4   :  { %v401_v24 = vrot.slane %v398_v17, 6  ;;  %v417_v25 = vadd.f32 %v415_v19, %v413_v16  ;;  %v416_v29 = vadd.f32 %v414_v18, %v412_v22  ;;  %v454_v2 = vadd.f32 %v452_v63, %v450_v26 }
  0xb5   :  { %v455_v27 = vadd.f32 %v453_v21, %v451_v20  ;;  %v384_v3 = vadd.f32 %v382_v4, %v741_v59  ;;  %v383_v34 = vadd.f32 %v381_v28, %v741_v59  ;;  %v434_v38 = vmul.f32 %v379_v15, %v751_v1 }
  0xb6   :  { %v402_v10 = vsel %vm125_vm0, %v397_v23, %v401_v24  ;;  %v420_v30 = vrot.slane %v417_v25, 6  ;;  %v433_v59 = vmul.f32 %v379_v15, %v749_v0 }
  0xb7   :  { %405 = vst [vmem:[#allocation9 + $0x3c] sm:$0xf] %v402_v10  ;;  %v458_v31 = vrot.slane %v455_v27, 6  ;;  %v387_v35 = vrot.slane %v384_v3, 6 }
  0xb8   :  { %v421_v32 = vsel %vm125_vm0, %v416_v29, %v420_v30 }
  0xb9   :  { %424 = vst [vmem:[#allocation9 + $0xc] sm:$0xf] %v421_v32  ;;  %v459_v33 = vsel %vm125_vm0, %v454_v2, %v458_v31  ;;  %v388_v14 = vsel %vm125_vm0, %v383_v34, %v387_v35 }
  0xba   :  { %462 = vst [vmem:[#allocation9 + $0x2c] sm:$0xf] %v459_v33  ;;  %v429_v36 = vpop.permute.xlu1 %428 }
  0xbb   :  { %v431_v37 = vmul.f32 %v429_v36, %v745_v62  ;;  %v432_v55 = vmul.f32 %v429_v36, %v743_v61  ;;  %391 = vst [vmem:[#allocation8 + $0xc] sm:$0xf] %v388_v14 }
  0xbc   :  { %475 = dma.vmem_to_hbm [thread:$0]  %s468_s2, 256, %s470_s7, [#allocation4], %s676_s29, %s676_s29, %s677_s30  }
  0xbd   :  { %v436_v39 = vadd.f32 %v434_v38, %v432_v55  ;;  %v435_v62 = vadd.f32 %v433_v59, %v431_v37 }
  0xbf   :  { %v439_v61 = vrot.slane %v436_v39, 6 }
  0xc1   :  { %v440_v1 = vsel %vm125_vm0, %v435_v62, %v439_v61 }
  0xc2   :  { %443 = vst [vmem:[#allocation9 + $0x1c] sm:$0xf] %v440_v1 }
  0xc3   :  { %488 = dma.vmem_to_hbm [thread:$0]  %s481_s8, 1024, %s483_s11, [#allocation10], %s676_s29, %s676_s29, %s677_s30  }
  0xc4   :  { %669 = dma.done.wait [#allocation4], 256  }
  0xc5   :  { %670 = vsyncadd [#allocation4], 4294967040 }
  0xc6   :  { %671 = dma.done.wait [#allocation10], 1024  }
  0xc7   :  { %672 = vsyncadd [#allocation10], 4294966272 }
  0xc8   :  { %497 = vsyncpa [#allocation3], 1 }
  0xc9   :  { %498 = vsyncpa [#allocation6], 1 }
  0xca   :  { %499 = vsyncpa [#allocation4], 1 }
  0xcb   :  { %500 = vsyncpa [#allocation10], 1 }

</bundles_post_ra>
